<compile_context>
chip_gen: v6e
topology: v6e:2x2x1
jax: 0.10.0
libtpu: 0.0.40
codegen_flags: <defaults>
</compile_context>

<pallas_src>
import math

import jax
import jax.numpy as jnp
from jax import lax
from jax.experimental import pallas as pl
from jax.experimental.pallas import tpu as pltpu


_NEG_PAD = -1e30  # sentinel logit for padded pixels -> key ~ +1e30 (sorts last)


def _round_up(x, m):
    return ((x + m - 1) // m) * m


def _cdiv(a, b):
    return (a + b - 1) // b


def _next_pow2(x):
    return 1 << max(0, int(x) - 1).bit_length()


# -------- Kernel A: hinge sort-keys (= -errors) + per-row label sums ----------

def _keys_kernel(x_ref, t_ref, key_ref, gts_ref):
    @pl.when(pl.program_id(0) == 0)
    def _():
        gts_ref[...] = jnp.zeros_like(gts_ref)

    x = x_ref[...].astype(jnp.float32)
    t = t_ref[...].astype(jnp.float32)
    # errors = 1 - x*(2t-1); key = -errors, so an ascending sort == descending errors
    key_ref[...] = x * (2.0 * t - 1.0) - 1.0
    gts_ref[...] += jnp.sum(t, axis=1, keepdims=True)


# -------- Kernel B: Lovász extension over the sorted errors -------------------

def _lovasz_kernel(gts_ref, tri_ref, key_ref, gt_ref, loss_ref,
                   ccar_ref, jcar_ref, acc_ref):
    j = pl.program_id(0)
    nb = pl.num_programs(0)
    B, bw = key_ref.shape
    tn = tri_ref.shape[0]
    R = bw // tn                       # static sub-block count per grid step

    @pl.when(j == 0)
    def _():
        ccar_ref[...] = jnp.zeros_like(ccar_ref)   # cumsum carry
        jcar_ref[...] = jnp.zeros_like(jcar_ref)   # previous-jaccard carry (0 @ i=1)
        acc_ref[...] = jnp.zeros_like(acc_ref)     # per-image loss accumulator

    gts = gts_ref[...]                 # total positives (B, 1), f32
    tri = tri_ref[...]                 # (tn, tn) bf16 upper-triangular ones
    lane = lax.broadcasted_iota(jnp.int32, (B, tn), 1)
    base = j * bw + 1                  # 1-indexed global position of lane 0, r=0

    c_carry = ccar_ref[...]
    jac_carry = jcar_ref[...]
    acc = jnp.zeros((B, 1), jnp.float32)

    # Unrolled inner loop over R sub-blocks amortizes grid-step overhead; all
    # slices are static and 128-lane aligned.
    for r in range(R):
        k = key_ref[:, r * tn:(r + 1) * tn]          # -errors_sorted  (B, tn) f32
        g = gt_ref[:, r * tn:(r + 1) * tn]            # gt_sorted       (B, tn) bf16
        # Inclusive cumsum of gt within the sub-block on the MXU: g @ T,
        # T[a, b] = 1 iff a <= b.  0/1 bf16 inputs, f32 accumulate -> exact.
        c = jnp.dot(g, tri, preferred_element_type=jnp.float32) + c_carry
        pos = (lane + (base + r * tn)).astype(jnp.float32)
        # jaccard_i = 1 - (gts - c_i) / (gts + i - c_i);  denominator >= 1 always.
        jac = 1.0 - (gts - c) / (gts + pos - c)
        # previous jaccard via XLU lane roll; lane 0 comes from the carry.
        prev = jnp.where(lane == 0, jac_carry, pltpu.roll(jac, shift=1, axis=1))
        # relu(errors_sorted) = max(-key, 0); padded pixels give exactly 0.
        acc = acc + jnp.sum(jnp.maximum(-k, 0.0) * (jac - prev),
                            axis=1, keepdims=True)
        c_carry = c[:, tn - 1:tn]
        jac_carry = jac[:, tn - 1:tn]

    ccar_ref[...] = c_carry
    jcar_ref[...] = jac_carry
    acc_ref[...] += acc

    @pl.when(j == nb - 1)
    def _():
        loss_ref[0, 0] = jnp.sum(acc_ref[...]) * (1.0 / B)   # mean over images


# -------- Wrapper --------------------------------------------------------------

def lovasz_hinge_loss(logits, labels, *, sub_block=512, max_sub_blocks=8,
                      tile_a=8192):
    """logits/labels: (B, 1, H, W) like the PyTorch module (any float dtype).
    Returns the scalar per-image Lovász hinge loss (float32)."""
    B = logits.shape[0]
    x2 = logits.reshape(B, -1)          # squeeze(1) + per-image flatten
    t2 = labels.reshape(B, -1)
    if not jnp.issubdtype(t2.dtype, jnp.floating):
        t2 = t2.astype(jnp.float32)
    # 0/1 labels are exact in bf16; halves sort payload + Kernel B HBM reads.
    t2 = t2.astype(jnp.bfloat16)
    N = x2.shape[1]

    # Kernel B blocking: R sub-blocks of width tn per grid step (tn fixes tri size).
    tn = sub_block if N >= sub_block else _round_up(N, 128)
    R = min(max_sub_blocks, max(1, _cdiv(N, tn)))
    bw = tn * R

    # Kernel A sublane fold so tiny batches still fill all 8 sublanes.
    r_a = 1 if B >= 8 else _next_pow2(_cdiv(8, B))

    n_pad = _round_up(N, math.lcm(bw, r_a * 128))
    if n_pad != N:
        pad_val = _NEG_PAD
        if jnp.issubdtype(x2.dtype, jnp.floating):
            # keep the sentinel finite in the input dtype
            pad_val = max(_NEG_PAD, -0.5 * float(jnp.finfo(x2.dtype).max))
        x2 = jnp.pad(x2, ((0, 0), (0, n_pad - N)), constant_values=pad_val)
        t2 = jnp.pad(t2, ((0, 0), (0, n_pad - N)))

    # ---- Kernel A: wide, sublane-filled elementwise pass ----------------------
    wa = n_pad // r_a
    tn_a = min(tile_a, wa)
    while wa % tn_a:                    # largest 128-multiple divisor <= tile_a
        tn_a -= 128
    na = wa // tn_a
    xr = x2.reshape(B * r_a, wa)        # free row-major reshape
    tr = t2.reshape(B * r_a, wa)

    keys, gts_rows = pl.pallas_call(
        _keys_kernel,
        out_shape=(jax.ShapeDtypeStruct((B * r_a, wa), jnp.float32),
                   jax.ShapeDtypeStruct((B * r_a, 1), jnp.float32)),
        grid_spec=pltpu.PrefetchScalarGridSpec(
            num_scalar_prefetch=0,
            grid=(na,),
            in_specs=[pl.BlockSpec((B * r_a, tn_a), lambda j: (0, j)),
                      pl.BlockSpec((B * r_a, tn_a), lambda j: (0, j))],
            out_specs=(pl.BlockSpec((B * r_a, tn_a), lambda j: (0, j)),
                       pl.BlockSpec((B * r_a, 1), lambda j: (0, 0)))),
        compiler_params=pltpu.CompilerParams(
            dimension_semantics=("arbitrary",)),
    )(xr, tr)

    keys = keys.reshape(B, n_pad)
    gts = gts_rows.reshape(B, r_a).sum(axis=1, keepdims=True)

    # TODO(synk): the global per-image descending sort (torch.sort) has no Pallas
    # TPU primitive; it is done with XLA's lax.sort between the two kernels.
    key_sorted, gt_sorted = lax.sort((keys, t2), dimension=1, num_keys=1,
                                     is_stable=False)

    # Upper-triangular ones matrix (bf16, 0/1 exact) for the blocked MXU cumsum;
    # constant block index, so it is DMA'd once and stays resident in VMEM.
    idx = jnp.arange(tn, dtype=jnp.int32)
    tri = (idx[:, None] <= idx[None, :]).astype(jnp.bfloat16)

    out = pl.pallas_call(
        _lovasz_kernel,
        out_shape=jax.ShapeDtypeStruct((1, 1), jnp.float32),
        grid_spec=pltpu.PrefetchScalarGridSpec(
            num_scalar_prefetch=0,
            grid=(n_pad // bw,),
            in_specs=[pl.BlockSpec((B, 1), lambda j: (0, 0)),
                      pl.BlockSpec((tn, tn), lambda j: (0, 0)),
                      pl.BlockSpec((B, bw), lambda j: (0, j)),
                      pl.BlockSpec((B, bw), lambda j: (0, j))],
            out_specs=pl.BlockSpec((1, 1), lambda j: (0, 0)),
            scratch_shapes=[pltpu.VMEM((B, 1), jnp.float32),   # cumsum carry
                            pltpu.VMEM((B, 1), jnp.float32),   # jaccard carry
                            pltpu.VMEM((B, 1), jnp.float32)]), # per-image loss
        compiler_params=pltpu.CompilerParams(
            dimension_semantics=("arbitrary",)),
    )(gts, tri, key_sorted, gt_sorted)
    return out[0, 0]


# -------- Pure-JAX reference (mirrors the PyTorch lovasz_hinge exactly) --------

def _reference(logits, labels):
    B = logits.shape[0]
    x = logits.reshape(B, -1).astype(jnp.float32)
    t = labels.reshape(B, -1).astype(jnp.float32)

    def per_image(lg, lb):
        signs = 2.0 * lb - 1.0
        errors = 1.0 - lg * signs
        order = jnp.argsort(-errors)
        errors_sorted = errors[order]
        gt_sorted = lb[order]
        gts = jnp.sum(gt_sorted)
        inter = gts - jnp.cumsum(gt_sorted)
        union = gts + jnp.cumsum(1.0 - gt_sorted)
        jac = 1.0 - inter / union
        grad = jnp.concatenate([jac[:1], jac[1:] - jac[:-1]])
        return jnp.sum(jnp.maximum(errors_sorted, 0.0) * grad)

    return jnp.mean(jax.vmap(per_image)(x, t))


if __name__ == "__main__":
    key = jax.random.PRNGKey(0)

    # (B, 1, 16, 16): two Kernel-B grid steps (carry across blocks);
    # (B, 1, 72, 72): exercises the unrolled R-sub-block inner loop + ragged pad.
    for (Bv, Hv, Wv) in ((2, 16, 16), (2, 72, 72)):
        k1, k2 = jax.random.split(jax.random.fold_in(key, Hv))
        logits = jax.random.normal(k1, (Bv, 1, Hv, Wv), dtype=jnp.float32)
        target = (jax.random.uniform(k2, (Bv, 1, Hv, Wv)) > 0.5).astype(jnp.float32)

        loss = jax.block_until_ready(lovasz_hinge_loss(logits, target))
        ref = _reference(logits, target)
        assert jnp.allclose(loss, ref, rtol=1e-4, atol=1e-4), (Hv, loss, ref)

    print("KERNEL_OK")
</pallas_src>

<mosaic_0001>
module attributes {stable_mosaic.version = 11 : i64} {
  func.func @_keys_kernel(%arg0: i32, %arg1: memref<8x128xf32, #tpu.memory_space<vmem>>, %arg2: memref<8x128xbf16, #tpu.memory_space<vmem>>, %arg3: memref<8x128xf32, #tpu.memory_space<vmem>>, %arg4: memref<8x1xf32, #tpu.memory_space<vmem>>) attributes {dimension_semantics = [#tpu.dimension_semantics<arbitrary>], iteration_bounds = array<i64: 1>, scalar_prefetch = 0 : i64, scratch_operands = 0 : i64, tpu.core_type = #tpu.core_type<tc>, window_params = [{transform_indices = @transform_0, window_bounds = array<i64: 8, 128>}, {transform_indices = @transform_1, window_bounds = array<i64: 8, 128>}, {transform_indices = @transform_2, window_bounds = array<i64: 8, 128>}, {pipeline_mode = #tpu.pipeline_mode<synchronous>, transform_indices = @transform_3, window_bounds = array<i64: 8, 1>}]} {
    %c0_i32 = arith.constant 0 : i32
    %0 = arith.cmpi eq, %arg0, %c0_i32 : i32
    %1 = arith.extui %0 : i1 to i32
    %c0_i32_0 = arith.constant 0 : i32
    %2 = arith.cmpi ne, %1, %c0_i32_0 : i32
    scf.if %2 {
      %cst_13 = arith.constant 0.000000e+00 : f32
      %19 = vector.broadcast %cst_13 : f32 to vector<8x1xf32>
      %c0_14 = arith.constant 0 : index
      %c0_15 = arith.constant 0 : index
      %20 = vector.load %arg4[%c0_14, %c0_15] : memref<8x1xf32, #tpu.memory_space<vmem>>, vector<8x1xf32>
      tpu.vector_store %arg4[%c0_14, %c0_15], %19 {strides = array<i32>} : memref<8x1xf32, #tpu.memory_space<vmem>>, vector<8x1xf32>,
    } else {
    }
    %c0 = arith.constant 0 : index
    %c0_1 = arith.constant 0 : index
    %3 = vector.load %arg1[%c0, %c0_1] : memref<8x128xf32, #tpu.memory_space<vmem>>, vector<8x128xf32>
    %c0_2 = arith.constant 0 : index
    %c0_3 = arith.constant 0 : index
    %4 = vector.load %arg2[%c0_2, %c0_3] : memref<8x128xbf16, #tpu.memory_space<vmem>>, vector<8x128xbf16>
    %5 = arith.extf %4 : vector<8x128xbf16> to vector<8x128xf32>
    %cst = arith.constant 2.000000e+00 : f32
    %6 = vector.broadcast %cst : f32 to vector<8x128xf32>
    %7 = arith.mulf %6, %5 : vector<8x128xf32>
    %cst_4 = arith.constant 1.000000e+00 : f32
    %8 = vector.broadcast %cst_4 : f32 to vector<8x128xf32>
    %9 = arith.subf %7, %8 : vector<8x128xf32>
    %10 = arith.mulf %3, %9 : vector<8x128xf32>
    %cst_5 = arith.constant 1.000000e+00 : f32
    %11 = vector.broadcast %cst_5 : f32 to vector<8x128xf32>
    %12 = arith.subf %10, %11 : vector<8x128xf32>
    %c0_6 = arith.constant 0 : index
    %c0_7 = arith.constant 0 : index
    %13 = vector.load %arg3[%c0_6, %c0_7] : memref<8x128xf32, #tpu.memory_space<vmem>>, vector<8x128xf32>
    tpu.vector_store %arg3[%c0_6, %c0_7], %12 {strides = array<i32>} : memref<8x128xf32, #tpu.memory_space<vmem>>, vector<8x128xf32>,
    %c0_8 = arith.constant 0 : index
    %c0_9 = arith.constant 0 : index
    %14 = vector.load %arg4[%c0_8, %c0_9] : memref<8x1xf32, #tpu.memory_space<vmem>>, vector<8x1xf32>
    %cst_10 = arith.constant dense<0.000000e+00> : vector<8xf32>
    %15 = vector.multi_reduction <add>, %5, %cst_10 [1] : vector<8x128xf32> to vector<8xf32>
    %16 = vector.shape_cast %15 : vector<8xf32> to vector<8x1xf32>
    %17 = arith.addf %14, %16 : vector<8x1xf32>
    %c0_11 = arith.constant 0 : index
    %c0_12 = arith.constant 0 : index
    %18 = vector.load %arg4[%c0_11, %c0_12] : memref<8x1xf32, #tpu.memory_space<vmem>>, vector<8x1xf32>
    tpu.vector_store %arg4[%c0_11, %c0_12], %17 {strides = array<i32>} : memref<8x1xf32, #tpu.memory_space<vmem>>, vector<8x1xf32>,
    return
  }
  func.func @transform_0(%arg0: i32) -> (i32, i32) {
    %c0_i32 = arith.constant 0 : i32
    %c0_i32_0 = arith.constant 0 : i32
    return %c0_i32, %arg0 : i32, i32
  }
  func.func @transform_1(%arg0: i32) -> (i32, i32) {
    %c0_i32 = arith.constant 0 : i32
    %c0_i32_0 = arith.constant 0 : i32
    return %c0_i32, %arg0 : i32, i32
  }
  func.func @transform_2(%arg0: i32) -> (i32, i32) {
    %c0_i32 = arith.constant 0 : i32
    %c0_i32_0 = arith.constant 0 : i32
    return %c0_i32, %arg0 : i32, i32
  }
  func.func @transform_3(%arg0: i32) -> (i32, i32) {
    %c0_i32 = arith.constant 0 : i32
    %c0_i32_0 = arith.constant 0 : i32
    %c0_i32_1 = arith.constant 0 : i32
    return %c0_i32, %c0_i32_0 : i32, i32
  }
}

</mosaic_0001>

<bundles_post_ra>
// kernel: tpu_custom_call.1
= control target key start
LH: loop header
LB: loop body
LE: loop exit
PB: predicated region body
PF: predicated region fallthrough
CT: control target
= control target key end

     0   :  { %9 = vsyncpa [#allocation3], 0  ;;  %s194_s0 = inlined_call_operand.hbm [shape: f32[8,128], index: 0, kind: input, shape index: {}]   ;;  %s195_s1 = inlined_call_operand.hbm [shape: bf16[8,128], index: 1, kind: input, shape index: {}]   ;;  %s196_s2 = inlined_call_operand.hbm [shape: f32[8,128], index: 2, kind: output, shape index: {0}]   ;;  %s197_s3 = inlined_call_operand.vmem [shape: f32[8,1], index: 3, kind: output, shape index: {1}]  }
   0x1   :  { %10 = vsyncpa [#allocation6], 0 }
   0x2   :  { %11 = vsyncpa [#allocation4], 0  ;;  %s150_s12 = smov [#allocation2]   ;;  %s151_s14 = smov [#allocation5]  }
   0x3   :  { %s18_s13 = sshll.u32 %s150_s12, 4  ;;  %s28_s15 = sshll.u32 %s151_s14, 4  ;;  %s19_s13 = int_to_ptr.vmem [resolvable:$true] %s18_s13  ;;  %s29_s15 = int_to_ptr.vmem [resolvable:$true] %s28_s15 }
   0x4   :  { %s92_s16 = scalar_lea.vmem %s19_s13, 128  ;;  %p97_p1 = scmp.lt.s32.totalorder %s19_s13, %s19_s13 }
   0x5   :  { %p93_p0 = scmp.ne.s32.totalorder %s19_s13, %s92_s16  ;;  %p98_p2 = scmp.lt.s32.totalorder %s92_s16, %s92_s16 }
   0x7   :  { %p99_p3 = por %p98_p2, %p97_p1 }
   0x9   :  { %p100_p4 = pnand %p99_p3, %p93_p0 }
   0xb   :  { %103 = shalt.err (!%p100_p4)
}
   0xc   :  { %21 = dma.hbm_to_vmem [thread:$0]  %s194_s0, 128, %s19_s13, [#allocation3]  }
   0xd   :  { %s112_s19 = scalar_lea.vmem %s29_s15, 64  ;;  %p117_p6 = scmp.lt.s32.totalorder %s29_s15, %s29_s15 }
   0xe   :  { %p113_p5 = scmp.ne.s32.totalorder %s29_s15, %s112_s19  ;;  %p118_p7 = scmp.lt.s32.totalorder %s112_s19, %s112_s19 }
  0x10   :  { %p119_p8 = por %p118_p7, %p117_p6 }
  0x12   :  { %p120_p9 = pnand %p119_p8, %p113_p5 }
  0x14   :  { %123 = shalt.err (!%p120_p9)
}
  0x15   :  { %31 = dma.hbm_to_vmem [thread:$0]  %s195_s1, 64, %s29_s15, [#allocation6]  }
  0x16   :  { %144 = dma.done.wait [#allocation3], 128  }
  0x17   :  { %145 = vsyncadd [#allocation3], 4294967168 }
  0x18   :  { %146 = dma.done.wait [#allocation6], 64  }
  0x19   :  { %147 = vsyncadd [#allocation6], 4294967232  ;;  %vm42_vm0 = vcmask 7168   ;;  %v152_v0 = vmov 0.0   ;;  %v45_v1 = vld [vmem:[#allocation5] sm:$0xf] }
  0x1a   :  { %43 = vst.msk [vmem:[%s197_s3] sm:$0xff] %vm42_vm0, %v152_v0  ;;  %v46_v2 = vunpack.c.l.bf16 %v45_v1  ;;  %v44_v5 = vld [vmem:[#allocation2] sm:$0xff]  ;;  %s153_s1 = smov [#allocation7]  }
  0x1b   :  { %s64_s23 = sshll.u32 %s153_s1, 4  ;;  %s65_s23 = int_to_ptr.vmem [resolvable:$true] %s64_s23 }
  0x1c   :  { %v47_v3 = vmul.f32 2.0, %v46_v2  ;;  %53 = vadd.xlane.f32.xlu0 %v46_v2  ;;  %s124_s24 = scalar_lea.vmem %s65_s23, 128  ;;  %p129_p11 = scmp.lt.s32.totalorder %s65_s23, %s65_s23 }
  0x1d   :  { %p125_p10 = scmp.ne.s32.totalorder %s65_s23, %s124_s24  ;;  %p130_p12 = scmp.lt.s32.totalorder %s124_s24, %s124_s24 }
  0x1e   :  { %v78_v4 = vadd.f32 -1.0, %v47_v3 }
  0x1f   :  { %p131_p13 = por %p130_p12, %p129_p11 }
  0x20   :  { %v49_v6 = vmul.f32 %v78_v4, %v44_v5 }
  0x21   :  { %p132_p0 = pnand %p131_p13, %p125_p10 }
  0x22   :  { %v79_v7 = vadd.f32 -1.0, %v49_v6 }
  0x24   :  { %51 = vst [vmem:[#allocation7] sm:$0xff] %v79_v7 }
  0x25   :  { %135 = shalt.err (!%p132_p0)
}
  0x26   :  { %67 = dma.vmem_to_hbm [thread:$0]  %s65_s23, 128, %s196_s2, [#allocation4]   ;;  %v52_v8 = vld [vmem:[%s197_s3] sm:$0xff] }
  0xa5   :  { %v54_v9 = vpop.xlane.xlu0 %53 }
  0xa6   :  { %v55_v10 = vadd.f32 %v54_v9, %v52_v8 }
  0xa8   :  { %57 = vst.msk [vmem:[%s197_s3] sm:$0xff] %vm42_vm0, %v55_v10 }
  0xa9   :  { %148 = dma.done.wait [#allocation4], 128  }
  0xaa   :  { %149 = vsyncadd [#allocation4], 4294967168 }
  0xab   :  { %75 = vsyncpa [#allocation3], 1 }
  0xac   :  { %76 = vsyncpa [#allocation6], 1 }
  0xad   :  { %77 = vsyncpa [#allocation4], 1 }

</bundles_post_ra>
